<compile_context>
chip_gen: v6e
topology: v6e:2x2x1
jax: 0.10.0
libtpu: 0.0.40
codegen_flags: <defaults>
</compile_context>

<pallas_src>
import math

import jax
import jax.numpy as jnp
from jax.experimental import pallas as pl
from jax.experimental.pallas import tpu as pltpu


def _round_up(x, m):
    return (x + m - 1) // m * m


def _amino_acid_embed_kernel(sr_ref, thi_ref, tmid_ref, tlo_ref,
                             invm_ref, phase_ref, out_ref):
    fold = invm_ref.shape[0]
    tr = sr_ref.shape[0]
    Kp, lanes = thi_ref.shape

    s = sr_ref[:, 0:fold]                                     # (tr, fold) int32, ids offset by slot*V
    rp = pltpu.bitcast(sr_ref[:, fold:2 * fold], jnp.float32)  # (tr, fold) f32 positions

    # ---- multi-hot over the block-diagonal vocab (disjoint V-ranges per slot) ----
    k_iota = jax.lax.broadcasted_iota(jnp.int32, (tr, Kp), 1)
    oh_bool = (s[:, 0:1] == k_iota)
    for t in range(1, fold):
        oh_bool = jnp.logical_or(oh_bool, s[:, t:t + 1] == k_iota)
    oh = jnp.where(oh_bool, 1.0, 0.0).astype(jnp.bfloat16)    # (tr, Kp), exact 0/1 in bf16

    # ---- residue embedding gather: 3 bf16 MXU passes reconstruct f32 table ----
    res = jnp.dot(oh, thi_ref[...], preferred_element_type=jnp.float32)
    res = res + jnp.dot(oh, tmid_ref[...], preferred_element_type=jnp.float32)
    res = res + jnp.dot(oh, tlo_ref[...], preferred_element_type=jnp.float32)

    # ---- sinusoidal position embedding: fold FMAs + one lane-dense sin pass ----
    # invm_ref[t] holds [f0,f0,f1,f1,...] only in lanes [t*D, (t+1)*D); 0 elsewhere.
    # phase_ref   holds [0, pi/2, 0, pi/2, ...] tiled over all groups, so
    # sin(x + pi/2) supplies the cos lanes in the same transcendental pass.
    ang = phase_ref[...] + rp[:, 0:1] * invm_ref[0:1, :]
    for t in range(1, fold):
        ang = ang + rp[:, t:t + 1] * invm_ref[t:t + 1, :]

    out_ref[...] = res + jnp.sin(ang)


def amino_acid_embedding(S, RP, embed_table, *, tile_n=8192):
    """S: (N,) residue types; RP: (N,) residue positions; embed_table: (V, D)."""
    N = int(S.shape[0])
    V, D = embed_table.shape
    V, D = int(V), int(D)

    # Fold `fold` tokens into each 128-lane row (4 for D=32). Falls back to the
    # plain per-token layout when D does not divide 128.
    fold = (128 // D) if (D % 2 == 0 and D <= 128 and 128 % D == 0) else 1
    lanes = fold * D

    rows = pl.cdiv(N, fold)
    n_tok = rows * fold
    if n_tok != N:                       # pad <= fold-1 tokens; sliced off at the end
        S = jnp.pad(S, (0, n_tok - N))
        RP = jnp.pad(RP, (0, n_tok - N))

    # ---- packed token stream: (rows, 2*fold) int32 = [s+slot*V | bits(rp)] ----
    slot_off = (jnp.arange(fold, dtype=jnp.int32) * V)[None, :]
    s2 = S.astype(jnp.int32).reshape(rows, fold) + slot_off
    rp_bits = jax.lax.bitcast_convert_type(
        RP.astype(jnp.float32).reshape(rows, fold), jnp.int32)
    sr = jnp.concatenate([s2, rp_bits], axis=1)                      # (rows, 2*fold)

    # ---- block-diagonal table, padded on K, split into bf16 hi/mid/lo ----
    eye = jnp.eye(fold, dtype=jnp.float32)
    table_blk = jnp.einsum('tu,vd->tvud', eye,
                           embed_table.astype(jnp.float32)).reshape(fold * V, lanes)
    Kp = _round_up(fold * V, 128)
    table_blk = jnp.pad(table_blk, ((0, Kp - fold * V), (0, 0)))
    t_hi = table_blk.astype(jnp.bfloat16)
    r1 = table_blk - t_hi.astype(jnp.float32)
    t_mid = r1.astype(jnp.bfloat16)
    t_lo = (r1 - t_mid.astype(jnp.float32)).astype(jnp.bfloat16)

    # ---- per-slot masked inverse-frequency rows + shared phase row ----
    half = jnp.arange(D // 2, dtype=jnp.float32)
    inv_half = jnp.power(jnp.float32(10000.0), -2.0 * half / D)      # (D/2,)
    inv_full = jnp.repeat(inv_half, 2)                               # f0,f0,f1,f1,... (D,)
    invm = (eye[:, :, None] * inv_full[None, None, :]).reshape(fold, lanes)
    phase = jnp.tile(jnp.tile(jnp.array([0.0, math.pi / 2.0], jnp.float32), D // 2),
                     fold).reshape(1, lanes)

    # ---- tile selection: big tiles (amortize ~0.35us/step), >=2 blocks for v7x ----
    max_tr = max(8, tile_n // fold)
    if rows < 16:
        tr = rows                                        # single tiny full-dim block
    else:
        tr = max(8, min(max_tr, _round_up(pl.cdiv(rows, 2), 8)))
    n_blocks = pl.cdiv(rows, tr)

    cost = pl.CostEstimate(
        flops=2 * rows * Kp * lanes * 3 + rows * lanes * (2 * fold + 2),
        transcendentals=rows * lanes,
        bytes_accessed=rows * lanes * 4 + rows * 2 * fold * 4
        + 3 * Kp * lanes * 2 + (fold + 1) * lanes * 4,
    )

    out = pl.pallas_call(
        _amino_acid_embed_kernel,
        out_shape=jax.ShapeDtypeStruct((rows, lanes), jnp.float32),
        grid=(n_blocks,),
        in_specs=[
            pl.BlockSpec((tr, 2 * fold), lambda i: (i, 0)),   # packed S/RP tile
            pl.BlockSpec((Kp, lanes), lambda i: (0, 0)),      # table hi  (resident)
            pl.BlockSpec((Kp, lanes), lambda i: (0, 0)),      # table mid (resident)
            pl.BlockSpec((Kp, lanes), lambda i: (0, 0)),      # table lo  (resident)
            pl.BlockSpec((fold, lanes), lambda i: (0, 0)),    # masked inv-freq rows
            pl.BlockSpec((1, lanes), lambda i: (0, 0)),       # phase row
        ],
        out_specs=pl.BlockSpec((tr, lanes), lambda i: (i, 0)),
        compiler_params=pltpu.CompilerParams(
            dimension_semantics=("parallel",),
            vmem_limit_bytes=32 * 1024 * 1024),
        cost_estimate=cost,
    )(sr, t_hi, t_mid, t_lo, invm, phase)

    out = out.reshape(n_tok, D)          # contiguous: lanes [t*D,(t+1)*D) of row r = token r*fold+t
    return out[:N] if n_tok != N else out


def reference(S, RP, embed_table):
    N = S.shape[0]
    V, D = embed_table.shape
    res = embed_table[S]
    idx = jnp.arange(D // 2, dtype=jnp.float32)
    inv = jnp.power(10000.0, -2.0 * idx / D)
    ang = RP.astype(jnp.float32)[:, None] * inv[None, :]
    pos = jnp.stack([jnp.sin(ang), jnp.cos(ang)], axis=-1).reshape(N, D)
    return res + pos


if __name__ == "__main__":
    num_res_type = 21       # V
    res_embed_size = 32     # D
    N = 8                   # sequence length

    key = jax.random.PRNGKey(0)
    k_tab, k_s, k_rp = jax.random.split(key, 3)

    # deterministic "nn.Embedding" weight init
    embed_table = jax.random.normal(k_tab, (num_res_type, res_embed_size),
                                    dtype=jnp.float32)
    S = jax.random.randint(k_s, (N,), 0, num_res_type, dtype=jnp.int32)
    RP = jax.random.randint(k_rp, (N,), 0, 100, dtype=jnp.int32)

    out = amino_acid_embedding(S, RP, embed_table)
    out = jax.block_until_ready(out)

    ref = reference(S, RP, embed_table)
    assert out.shape == (N, res_embed_size)
    assert jnp.allclose(out, ref, atol=1e-5, rtol=1e-5), "mismatch vs reference"
    print("KERNEL_OK")
</pallas_src>

<mosaic_0001>
module attributes {stable_mosaic.version = 11 : i64} {
  func.func @_amino_acid_embed_kernel(%arg0: i32, %arg1: memref<2x8xi32, #tpu.memory_space<vmem>>, %arg2: memref<128x128xbf16, #tpu.memory_space<vmem>>, %arg3: memref<128x128xbf16, #tpu.memory_space<vmem>>, %arg4: memref<128x128xbf16, #tpu.memory_space<vmem>>, %arg5: memref<4x128xf32, #tpu.memory_space<vmem>>, %arg6: memref<1x128xf32, #tpu.memory_space<vmem>>, %arg7: memref<2x128xf32, #tpu.memory_space<vmem>>) attributes {dimension_semantics = [#tpu.dimension_semantics<parallel>], iteration_bounds = array<i64: 1>, scalar_prefetch = 0 : i64, scratch_operands = 0 : i64, tpu.core_type = #tpu.core_type<tc>, window_params = [{transform_indices = @transform_0, window_bounds = array<i64: 2, 8>}, {pipeline_mode = #tpu.pipeline_mode<synchronous>, transform_indices = @transform_1, window_bounds = array<i64: 128, 128>}, {pipeline_mode = #tpu.pipeline_mode<synchronous>, transform_indices = @transform_2, window_bounds = array<i64: 128, 128>}, {pipeline_mode = #tpu.pipeline_mode<synchronous>, transform_indices = @transform_3, window_bounds = array<i64: 128, 128>}, {pipeline_mode = #tpu.pipeline_mode<synchronous>, transform_indices = @transform_4, window_bounds = array<i64: 4, 128>}, {pipeline_mode = #tpu.pipeline_mode<synchronous>, transform_indices = @transform_5, window_bounds = array<i64: 1, 128>}, {transform_indices = @transform_6, window_bounds = array<i64: 2, 128>}]} {
    %c0 = arith.constant 0 : index
    %c0_0 = arith.constant 0 : index
    %0 = vector.load %arg1[%c0, %c0_0] : memref<2x8xi32, #tpu.memory_space<vmem>>, vector<2x4xi32>
    %c0_1 = arith.constant 0 : index
    %c4 = arith.constant 4 : index
    %1 = vector.load %arg1[%c0_1, %c4] : memref<2x8xi32, #tpu.memory_space<vmem>>, vector<2x4xi32>
    %2 = tpu.bitcast %1 : vector<2x4xi32> -> vector<2x4xf32>
    %3 = tpu.iota {dimensions = array<i32: 1>} : vector<2x128xi32>
    %4 = vector.extract_strided_slice %0 {offsets = [0, 0], sizes = [2, 1], strides = [1, 1]} : vector<2x4xi32> to vector<2x1xi32>
    %5 = vector.broadcast %4 : vector<2x1xi32> to vector<2x128xi32>
    %6 = arith.cmpi eq, %5, %3 : vector<2x128xi32>
    %7 = vector.extract_strided_slice %0 {offsets = [0, 1], sizes = [2, 1], strides = [1, 1]} : vector<2x4xi32> to vector<2x1xi32>
    %8 = vector.broadcast %7 : vector<2x1xi32> to vector<2x128xi32>
    %9 = arith.cmpi eq, %8, %3 : vector<2x128xi32>
    %10 = arith.ori %6, %9 : vector<2x128xi1>
    %11 = vector.extract_strided_slice %0 {offsets = [0, 2], sizes = [2, 1], strides = [1, 1]} : vector<2x4xi32> to vector<2x1xi32>
    %12 = vector.broadcast %11 : vector<2x1xi32> to vector<2x128xi32>
    %13 = arith.cmpi eq, %12, %3 : vector<2x128xi32>
    %14 = arith.ori %10, %13 : vector<2x128xi1>
    %15 = vector.extract_strided_slice %0 {offsets = [0, 3], sizes = [2, 1], strides = [1, 1]} : vector<2x4xi32> to vector<2x1xi32>
    %16 = vector.broadcast %15 : vector<2x1xi32> to vector<2x128xi32>
    %17 = arith.cmpi eq, %16, %3 : vector<2x128xi32>
    %18 = arith.ori %14, %17 : vector<2x128xi1>
    %cst = arith.constant 1.000000e+00 : f32
    %cst_2 = arith.constant 0.000000e+00 : f32
    %19 = vector.broadcast %cst : f32 to vector<2x128xf32>
    %20 = vector.broadcast %cst_2 : f32 to vector<2x128xf32>
    %21 = arith.select %18, %19, %20 : vector<2x128xi1>, vector<2x128xf32>
    %22 = arith.truncf %21 : vector<2x128xf32> to vector<2x128xbf16>
    %c0_3 = arith.constant 0 : index
    %c0_4 = arith.constant 0 : index
    %23 = vector.load %arg2[%c0_3, %c0_4] : memref<128x128xbf16, #tpu.memory_space<vmem>>, vector<128x128xbf16>
    %cst_5 = arith.constant dense<0.000000e+00> : vector<2x128xf32>
    %24 = tpu.matmul %22, %23, %cst_5 {dimension_numbers = #tpu.dot_dimension_numbers<[1], [0], [0], [1], [0, 0, 1, 1], [], []>} : vector<2x128xbf16>, vector<128x128xbf16>, vector<2x128xf32> -> vector<2x128xf32>
    %c0_6 = arith.constant 0 : index
    %c0_7 = arith.constant 0 : index
    %25 = vector.load %arg3[%c0_6, %c0_7] : memref<128x128xbf16, #tpu.memory_space<vmem>>, vector<128x128xbf16>
    %cst_8 = arith.constant dense<0.000000e+00> : vector<2x128xf32>
    %26 = tpu.matmul %22, %25, %cst_8 {dimension_numbers = #tpu.dot_dimension_numbers<[1], [0], [0], [1], [0, 0, 1, 1], [], []>} : vector<2x128xbf16>, vector<128x128xbf16>, vector<2x128xf32> -> vector<2x128xf32>
    %27 = arith.addf %24, %26 : vector<2x128xf32>
    %c0_9 = arith.constant 0 : index
    %c0_10 = arith.constant 0 : index
    %28 = vector.load %arg4[%c0_9, %c0_10] : memref<128x128xbf16, #tpu.memory_space<vmem>>, vector<128x128xbf16>
    %cst_11 = arith.constant dense<0.000000e+00> : vector<2x128xf32>
    %29 = tpu.matmul %22, %28, %cst_11 {dimension_numbers = #tpu.dot_dimension_numbers<[1], [0], [0], [1], [0, 0, 1, 1], [], []>} : vector<2x128xbf16>, vector<128x128xbf16>, vector<2x128xf32> -> vector<2x128xf32>
    %30 = arith.addf %27, %29 : vector<2x128xf32>
    %c0_12 = arith.constant 0 : index
    %c0_13 = arith.constant 0 : index
    %31 = vector.load %arg6[%c0_12, %c0_13] : memref<1x128xf32, #tpu.memory_space<vmem>>, vector<1x128xf32>
    %32 = vector.extract_strided_slice %2 {offsets = [0, 0], sizes = [2, 1], strides = [1, 1]} : vector<2x4xf32> to vector<2x1xf32>
    %c0_14 = arith.constant 0 : index
    %c0_15 = arith.constant 0 : index
    %33 = vector.load %arg5[%c0_14, %c0_15] : memref<4x128xf32, #tpu.memory_space<vmem>>, vector<1x128xf32>
    %34 = vector.broadcast %32 : vector<2x1xf32> to vector<2x128xf32>
    %35 = vector.broadcast %33 : vector<1x128xf32> to vector<2x128xf32>
    %36 = arith.mulf %34, %35 : vector<2x128xf32>
    %37 = vector.broadcast %31 : vector<1x128xf32> to vector<2x128xf32>
    %38 = arith.addf %37, %36 : vector<2x128xf32>
    %39 = vector.extract_strided_slice %2 {offsets = [0, 1], sizes = [2, 1], strides = [1, 1]} : vector<2x4xf32> to vector<2x1xf32>
    %c1 = arith.constant 1 : index
    %c0_16 = arith.constant 0 : index
    %40 = vector.load %arg5[%c1, %c0_16] : memref<4x128xf32, #tpu.memory_space<vmem>>, vector<1x128xf32>
    %41 = vector.broadcast %39 : vector<2x1xf32> to vector<2x128xf32>
    %42 = vector.broadcast %40 : vector<1x128xf32> to vector<2x128xf32>
    %43 = arith.mulf %41, %42 : vector<2x128xf32>
    %44 = arith.addf %38, %43 : vector<2x128xf32>
    %45 = vector.extract_strided_slice %2 {offsets = [0, 2], sizes = [2, 1], strides = [1, 1]} : vector<2x4xf32> to vector<2x1xf32>
    %c2 = arith.constant 2 : index
    %c0_17 = arith.constant 0 : index
    %46 = vector.load %arg5[%c2, %c0_17] : memref<4x128xf32, #tpu.memory_space<vmem>>, vector<1x128xf32>
    %47 = vector.broadcast %45 : vector<2x1xf32> to vector<2x128xf32>
    %48 = vector.broadcast %46 : vector<1x128xf32> to vector<2x128xf32>
    %49 = arith.mulf %47, %48 : vector<2x128xf32>
    %50 = arith.addf %44, %49 : vector<2x128xf32>
    %51 = vector.extract_strided_slice %2 {offsets = [0, 3], sizes = [2, 1], strides = [1, 1]} : vector<2x4xf32> to vector<2x1xf32>
    %c3 = arith.constant 3 : index
    %c0_18 = arith.constant 0 : index
    %52 = vector.load %arg5[%c3, %c0_18] : memref<4x128xf32, #tpu.memory_space<vmem>>, vector<1x128xf32>
    %53 = vector.broadcast %51 : vector<2x1xf32> to vector<2x128xf32>
    %54 = vector.broadcast %52 : vector<1x128xf32> to vector<2x128xf32>
    %55 = arith.mulf %53, %54 : vector<2x128xf32>
    %56 = arith.addf %50, %55 : vector<2x128xf32>
    %57 = math.sin %56 : vector<2x128xf32>
    %58 = arith.addf %30, %57 : vector<2x128xf32>
    %c0_19 = arith.constant 0 : index
    %c0_20 = arith.constant 0 : index
    %59 = vector.load %arg7[%c0_19, %c0_20] : memref<2x128xf32, #tpu.memory_space<vmem>>, vector<2x128xf32>
    tpu.vector_store %arg7[%c0_19, %c0_20], %58 {strides = array<i32>} : memref<2x128xf32, #tpu.memory_space<vmem>>, vector<2x128xf32>,
    return
  }
  func.func @transform_0(%arg0: i32) -> (i32, i32) {
    %c0_i32 = arith.constant 0 : i32
    %c0_i32_0 = arith.constant 0 : i32
    return %arg0, %c0_i32 : i32, i32
  }
  func.func @transform_1(%arg0: i32) -> (i32, i32) {
    %c0_i32 = arith.constant 0 : i32
    %c0_i32_0 = arith.constant 0 : i32
    %c0_i32_1 = arith.constant 0 : i32
    return %c0_i32, %c0_i32_0 : i32, i32
  }
  func.func @transform_2(%arg0: i32) -> (i32, i32) {
    %c0_i32 = arith.constant 0 : i32
    %c0_i32_0 = arith.constant 0 : i32
    %c0_i32_1 = arith.constant 0 : i32
    return %c0_i32, %c0_i32_0 : i32, i32
  }
  func.func @transform_3(%arg0: i32) -> (i32, i32) {
    %c0_i32 = arith.constant 0 : i32
    %c0_i32_0 = arith.constant 0 : i32
    %c0_i32_1 = arith.constant 0 : i32
    return %c0_i32, %c0_i32_0 : i32, i32
  }
  func.func @transform_4(%arg0: i32) -> (i32, i32) {
    %c0_i32 = arith.constant 0 : i32
    %c0_i32_0 = arith.constant 0 : i32
    %c0_i32_1 = arith.constant 0 : i32
    return %c0_i32, %c0_i32_0 : i32, i32
  }
  func.func @transform_5(%arg0: i32) -> (i32, i32) {
    %c0_i32 = arith.constant 0 : i32
    %c0_i32_0 = arith.constant 0 : i32
    %c0_i32_1 = arith.constant 0 : i32
    return %c0_i32, %c0_i32_0 : i32, i32
  }
  func.func @transform_6(%arg0: i32) -> (i32, i32) {
    %c0_i32 = arith.constant 0 : i32
    %c0_i32_0 = arith.constant 0 : i32
    return %arg0, %c0_i32 : i32, i32
  }
}

</mosaic_0001>

<bundles_post_ra>
// kernel: tpu_custom_call.1
= control target key start
LH: loop header
LB: loop body
LE: loop exit
PB: predicated region body
PF: predicated region fallthrough
CT: control target
= control target key end

     0   :  { %11 = vsyncpa [#allocation3], 0  ;;  %s1059_s0 = inlined_call_operand.hbm [shape: s32[2,8], index: 0, kind: input, shape index: {}]   ;;  %s1060_s1 = inlined_call_operand.hbm [shape: bf16[128,128], index: 1, kind: input, shape index: {}]   ;;  %s1061_s2 = inlined_call_operand.hbm [shape: bf16[128,128], index: 2, kind: input, shape index: {}]   ;;  %s1062_s3 = inlined_call_operand.hbm [shape: bf16[128,128], index: 3, kind: input, shape index: {}]   ;;  %s1063_s4 = inlined_call_operand.vmem [shape: f32[4,128], index: 4, kind: input, shape index: {}]   ;;  %s1064_s5 = inlined_call_operand.vmem [shape: f32[1,128], index: 5, kind: input, shape index: {}]   ;;  %s1065_s6 = inlined_call_operand.hbm [shape: f32[2,128], index: 6, kind: output, shape index: {}]  }
   0x1   :  { %12 = vsyncpa [#allocation6], 0 }
   0x2   :  { %13 = vsyncpa [#allocation9], 0 }
   0x3   :  { %14 = vsyncpa [#allocation4], 0  ;;  %s888_s21 = smov [#allocation5]  }
   0x4   :  { %s30_s22 = sshll.u32 %s888_s21, 4  ;;  %s31_s22 = int_to_ptr.vmem [resolvable:$true] %s30_s22 }
   0x5   :  { %s788_s23 = scalar_lea.vmem %s31_s22, 1024  ;;  %p793_p1 = scmp.lt.s32.totalorder %s31_s22, %s31_s22 }
   0x6   :  { %p789_p0 = scmp.ne.s32.totalorder %s31_s22, %s788_s23  ;;  %p794_p2 = scmp.lt.s32.totalorder %s788_s23, %s788_s23 }
   0x8   :  { %p795_p3 = por %p794_p2, %p793_p1 }
   0xa   :  { %p796_p4 = pnand %p795_p3, %p789_p0 }
   0xc   :  { %799 = shalt.err (!%p796_p4)
}
   0xd   :  { %s889_s24 = smov 64   ;;  %s890_s25 = smov 4  }
   0xe   :  { %36 = dma.hbm_to_vmem [thread:$0]  %s1060_s1, 1024, %s31_s22, [#allocation6], %s889_s24, %s889_s24, %s890_s25  }
   0xf   :  { %s891_s28 = smov [#allocation2]   ;;  %s892_s30 = smov [#allocation7]  }
  0x10   :  { %s21_s29 = sshll.u32 %s891_s28, 4  ;;  %s42_s7 = sshll.u32 %s892_s30, 4  ;;  %s22_s29 = int_to_ptr.vmem [resolvable:$true] %s21_s29  ;;  %s43_s7 = int_to_ptr.vmem [resolvable:$true] %s42_s7 }
  0x11   :  { %s808_s8 = scalar_lea.vmem %s22_s29, 32  ;;  %p813_p6 = scmp.lt.s32.totalorder %s22_s29, %s22_s29 }
  0x12   :  { %p809_p5 = scmp.ne.s32.totalorder %s22_s29, %s808_s8  ;;  %p814_p7 = scmp.lt.s32.totalorder %s808_s8, %s808_s8 }
  0x14   :  { %p815_p8 = por %p814_p7, %p813_p6 }
  0x16   :  { %p816_p9 = pnand %p815_p8, %p809_p5 }
  0x18   :  { %819 = shalt.err (!%p816_p9)
}
  0x19   :  { %24 = dma.hbm_to_vmem [thread:$0]  %s1059_s0, 32, %s22_s29, [#allocation3]  }
  0x1a   :  { %s828_s11 = scalar_lea.vmem %s43_s7, 1024  ;;  %p833_p11 = scmp.lt.s32.totalorder %s43_s7, %s43_s7 }
  0x1b   :  { %p829_p10 = scmp.ne.s32.totalorder %s43_s7, %s828_s11  ;;  %p834_p12 = scmp.lt.s32.totalorder %s828_s11, %s828_s11 }
  0x1d   :  { %p835_p13 = por %p834_p12, %p833_p11 }
  0x1f   :  { %p836_p0 = pnand %p835_p13, %p829_p10 }
  0x21   :  { %839 = shalt.err (!%p836_p0)
}
  0x22   :  { %48 = dma.hbm_to_vmem [thread:$0]  %s1061_s2, 1024, %s43_s7, [#allocation6], %s889_s24, %s889_s24, %s890_s25  }
  0x23   :  { %s893_s13 = smov [#allocation8]  }
  0x24   :  { %s54_s14 = sshll.u32 %s893_s13, 4  ;;  %s55_s14 = int_to_ptr.vmem [resolvable:$true] %s54_s14 }
  0x25   :  { %s848_s15 = scalar_lea.vmem %s55_s14, 1024  ;;  %p853_p2 = scmp.lt.s32.totalorder %s55_s14, %s55_s14 }
  0x26   :  { %p849_p1 = scmp.ne.s32.totalorder %s55_s14, %s848_s15  ;;  %p854_p3 = scmp.lt.s32.totalorder %s848_s15, %s848_s15 }
  0x28   :  { %p855_p4 = por %p854_p3, %p853_p2 }
  0x2a   :  { %p856_p5 = pnand %p855_p4, %p849_p1 }
  0x2c   :  { %859 = shalt.err (!%p856_p5)
}
  0x2d   :  { %60 = dma.hbm_to_vmem [thread:$0]  %s1062_s3, 1024, %s55_s14, [#allocation9], %s889_s24, %s889_s24, %s890_s25  }
  0x2e   :  { %880 = dma.done.wait [#allocation3], 32  }
  0x2f   :  { %881 = vsyncadd [#allocation3], 4294967264 }
  0x30   :  { %882 = dma.done.wait [#allocation6], 2048  }
  0x31   :  { %883 = vsyncadd [#allocation6], 4294965248 }
  0x32   :  { %884 = dma.done.wait [#allocation9], 1024  }
  0x33   :  { %885 = vsyncadd [#allocation9], 4294966272  ;;  %v894_v0 = vmov 0   ;;  %v895_v1 = vmov 2   ;;  %v896_v2 = vmov 0.0   ;;  %v752_v4 = vld [vmem:[#allocation7 + $0x38] sm:$0xff]   ;;  %v79_v26 = vlaneseq }
  0x34   :  { %743 = vset.pattern.permute.xlu0 %v894_v0  ;;  %745 = vset.pattern.permute.xlu1 %v895_v1  ;;  %v78_v3 = vld [vmem:[#allocation2] sm:$0x3]  ;;  %v754_v6 = vld [vmem:[#allocation7 + $0x30] sm:$0xff]   ;;  %v897_v8 = vmov 1   ;;  %v898_v9 = vmov 3   ;;  %v756_v10 = vld [vmem:[#allocation7 + $0x28] sm:$0xff]  }
  0x35   :  { %655 = vmatprep.subr.bf16.mxu0 %v896_v2  ;;  %675 = vmatprep.subr.bf16.mxu1 %v896_v2  ;;  %v753_v5 = vld [vmem:[#allocation5 + $0x38] sm:$0xff]   ;;  %v755_v7 = vld [vmem:[#allocation5 + $0x30] sm:$0xff]   ;;  %v757_v11 = vld [vmem:[#allocation5 + $0x28] sm:$0xff]   ;;  %vm899_vm0 = vmmov 0   ;;  %v900_v12 = vmov 4   ;;  %v901_v13 = vmov 5  }
  0x36   :  { %82 = vperm.xlu0 %743, %v78_v3   ;;  %91 = vperm.xlu1 %745, %v78_v3   ;;  %v758_v14 = vld [vmem:[#allocation7 + $0x20] sm:$0xff]   ;;  %v902_v16 = vmov 6   ;;  %v903_v17 = vmov 7   ;;  %v760_v18 = vld [vmem:[#allocation7 + $0x18] sm:$0xff]   ;;  %v762_v20 = vld [vmem:[#allocation7 + $0x10] sm:$0xff]   ;;  %v80_v29 = vand.u32 127, %v79_v26 }
  0x37   :  { %656 = vmatpush3.bf16.msra.mxu0 %v752_v4  ;;  %676 = vmatpush3.bf16.msra.mxu1 %v753_v5  ;;  %v759_v15 = vld [vmem:[#allocation5 + $0x20] sm:$0xff]   ;;  %v761_v19 = vld [vmem:[#allocation5 + $0x18] sm:$0xff]   ;;  %v763_v21 = vld [vmem:[#allocation5 + $0x10] sm:$0xff]   ;;  %v904_v34 = vmov 1.0|1.0  }
  0x38   :  { %657 = vmatprep.subr.bf16.mxu0 %v896_v2  ;;  %677 = vmatprep.subr.bf16.mxu1 %v896_v2  ;;  %v764_v22 = vld [vmem:[#allocation7 + $0x8] sm:$0xff]   ;;  %v766_v24 = vld [vmem:[#allocation7] sm:$0xff]   ;;  %v768_v32 = vld [vmem:[#allocation8 + $0x38] sm:$0xff]   ;;  %v906_v4 = vmov 920167782  }
  0x39   :  { %671 = vmatprep.mubr.msk.bf16.mxu0 %vm899_vm0, %v896_v2  ;;  %691 = vmatprep.mubr.msk.bf16.mxu1 %vm899_vm0, %v896_v2  ;;  %v765_v23 = vld [vmem:[#allocation5 + $0x8] sm:$0xff]   ;;  %v767_v25 = vld [vmem:[#allocation5] sm:$0xff]   ;;  %v769_v35 = vld [vmem:[#allocation8 + $0x30] sm:$0xff]  }
  0x3a   :  { %744 = vset.pattern.permute.xlu0 %v897_v8  ;;  %746 = vset.pattern.permute.xlu1 %v898_v9  ;;  %v770_v36 = vld [vmem:[#allocation8 + $0x28] sm:$0xff]   ;;  %v771_v37 = vld [vmem:[#allocation8 + $0x20] sm:$0xff]   ;;  %v772_v38 = vld [vmem:[#allocation8 + $0x18] sm:$0xff]   ;;  %v907_v8 = vmov 1326507024  }
  0x3b   :  { %86 = vperm.xlu0 %744, %v78_v3   ;;  %96 = vperm.xlu1 %746, %v78_v3   ;;  %v773_v39 = vld [vmem:[#allocation8 + $0x10] sm:$0xff]   ;;  %v774_v40 = vld [vmem:[#allocation8 + $0x8] sm:$0xff]   ;;  %v775_v41 = vld [vmem:[#allocation8] sm:$0xff]  }
  0x3c   :  { %658 = vmatpush3.bf16.msra.mxu0 %v754_v6  ;;  %678 = vmatpush3.bf16.msra.mxu1 %v755_v7  ;;  %v619_v42 = vld [vmem:[%s1063_s4] ss:$0 sm:$0xff]  ;;  %v621_v46 = vld [vmem:[%s1063_s4 + $0x1] ss:$0 sm:$0xff]  ;;  %v622_v51 = vld [vmem:[%s1063_s4 + $0x2] ss:$0 sm:$0xff] }
  0x3d   :  { %659 = vmatprep.subr.bf16.mxu0 %v896_v2  ;;  %679 = vmatprep.subr.bf16.mxu1 %v896_v2  ;;  %v620_v45 = vld [vmem:[%s1064_s5] ss:$0 sm:$0xff]  ;;  %v623_v54 = vld [vmem:[%s1063_s4 + $0x3] ss:$0 sm:$0xff]  ;;  %s911_s4 = smov [#allocation10]  }
  0x3e   :  { %s578_s5 = sshll.u32 %s911_s4, 4  ;;  %s579_s5 = int_to_ptr.vmem [resolvable:$true] %s578_s5 }
  0x3f   :  { %747 = vset.pattern.permute.xlu1 %v900_v12  ;;  %748 = vset.pattern.permute.xlu0 %v901_v13  ;;  %v909_v13 = vmov 2475754826   ;;  %s860_s25 = scalar_lea.vmem %s579_s5, 32  ;;  %p865_p7 = scmp.lt.s32.totalorder %s579_s5, %s579_s5 }
  0x40   :  { %418 = vperm.xlu1 %747, %v78_v3   ;;  %435 = vperm.xlu0 %748, %v78_v3   ;;  %p861_p6 = scmp.ne.s32.totalorder %s579_s5, %s860_s25  ;;  %p866_p8 = scmp.lt.s32.totalorder %s860_s25, %s860_s25 }
  0x41   :  { %660 = vmatpush3.bf16.msra.mxu0 %v756_v10  ;;  %680 = vmatpush3.bf16.msra.mxu1 %v757_v11  ;;  %v908_v11 = vmov 683565275  }
  0x42   :  { %661 = vmatprep.subr.bf16.mxu0 %v896_v2  ;;  %681 = vmatprep.subr.bf16.mxu1 %v896_v2  ;;  %p867_p9 = por %p866_p8, %p865_p7 }
  0x44   :  { %749 = vset.pattern.permute.xlu1 %v902_v16  ;;  %751 = vset.pattern.permute.xlu0 %v903_v17  ;;  %v910_v16 = vmov 2131351028   ;;  %p868_p10 = pnand %p867_p9, %p861_p6 }
  0x45   :  { %446 = vperm.xlu1 %749, %v78_v3   ;;  %662 = vmatpush3.bf16.msra.mxu0 %v758_v14 }
  0x46   :  { %682 = vmatpush3.bf16.msra.mxu1 %v759_v15  ;;  %663 = vmatprep.subr.bf16.mxu0 %v896_v2 }
  0x47   :  { %683 = vmatprep.subr.bf16.mxu1 %v896_v2 }
  0x49   :  { %750 = vset.pattern.permute.xlu1 %v903_v17  ;;  %664 = vmatpush3.bf16.msra.mxu0 %v760_v18 }
  0x4a   :  { %457 = vperm.xlu1 %750, %v78_v3   ;;  %684 = vmatpush3.bf16.msra.mxu1 %v761_v19 }
  0x4b   :  { %665 = vmatprep.subr.bf16.mxu0 %v896_v2  ;;  %685 = vmatprep.subr.bf16.mxu1 %v896_v2 }
  0x4d   :  { %666 = vmatpush3.bf16.msra.mxu0 %v762_v20 }
  0x4e   :  { %686 = vmatpush3.bf16.msra.mxu1 %v763_v21  ;;  %667 = vmatprep.subr.bf16.mxu0 %v896_v2 }
  0x4f   :  { %687 = vmatprep.subr.bf16.mxu1 %v896_v2 }
  0x51   :  { %668 = vmatpush3.bf16.msra.mxu0 %v764_v22 }
  0x52   :  { %688 = vmatpush3.bf16.msra.mxu1 %v765_v23  ;;  %669 = vmatprep.subr.bf16.mxu0 %v896_v2 }
  0x53   :  { %689 = vmatprep.subr.bf16.mxu1 %v896_v2 }
  0x55   :  { %670 = vmatpush3.bf16.msra.mxu0 %v766_v24 }
  0x56   :  { %690 = vmatpush3.bf16.msra.mxu1 %v767_v25  ;;  %695 = vmatprep.subr.bf16.mxu0 %v896_v2 }
  0xb1   :  { %v83_v27 = vpop.permute.xlu0 %82  ;;  %v92_v28 = vpop.permute.xlu1 %91 }
  0xb2   :  { %vm84_vm1 = vcmp.eq.s32.totalorder %v83_v27, %v80_v29  ;;  %vm93_vm4 = vcmp.eq.s32.totalorder %v92_v28, %v80_v29 }
  0xb6   :  { %v87_v30 = vpop.permute.xlu0 %86  ;;  %v97_v31 = vpop.permute.xlu1 %96 }
  0xb7   :  { %vm88_vm2 = vcmp.eq.s32.totalorder %v87_v30, %v80_v29  ;;  %vm98_vm3 = vcmp.eq.s32.totalorder %v97_v31, %v80_v29 }
  0xb8   :  { %vm89_vm5 = vmor %vm84_vm1, %vm88_vm2 }
  0xb9   :  { %vm94_vm6 = vmor %vm89_vm5, %vm93_vm4 }
  0xba   :  { %vm99_vm7 = vmor %vm94_vm6, %vm98_vm3 }
  0xbb   :  { %vm989_vm8 = vmpackc.low %vm99_vm7, %vm99_vm7  ;;  %v419_v43 = vpop.permute.xlu1 %418  ;;  %v436_v47 = vpop.permute.xlu0 %435 }
  0xbc   :  { %672 = vmatmul.mubr.msk.bf16.vlgmr.msra.gmra.mxu0 %vm989_vm8, %v904_v34  ;;  %692 = vmatmul.mubr.msk.bf16.vlgmr.msra.gmra.mxu1 %vm989_vm8, %v904_v34  ;;  %v425_v44 = vmul.f32 %v619_v42, %v419_v43  ;;  %v442_v50 = vmul.f32 %v621_v46, %v436_v47 }
  0xbd   :  { %696 = vmatpush3.bf16.msra.mxu0 %v768_v32  ;;  %711 = vmatprep.mubr.msk.bf16.mxu0 %vm899_vm0, %v896_v2 }
  0xbe   :  { %697 = vmatprep.subr.bf16.mxu0 %v896_v2  ;;  %v432_v49 = vadd.f32 %v620_v45, %v425_v44 }
  0xc0   :  { %v447_v48 = vpop.permute.xlu1 %446  ;;  %v443_v53 = vadd.f32 %v442_v50, %v432_v49 }
  0xc1   :  { %698 = vmatpush3.bf16.msra.mxu0 %v769_v35  ;;  %v453_v52 = vmul.f32 %v622_v51, %v447_v48 }
  0xc2   :  { %699 = vmatprep.subr.bf16.mxu0 %v896_v2 }
  0xc3   :  { %v454_v56 = vadd.f32 %v453_v52, %v443_v53 }
  0xc5   :  { %700 = vmatpush3.bf16.msra.mxu0 %v770_v36  ;;  %v458_v55 = vpop.permute.xlu1 %457 }
  0xc6   :  { %701 = vmatprep.subr.bf16.mxu0 %v896_v2  ;;  %v464_v57 = vmul.f32 %v623_v54, %v458_v55 }
  0xc8   :  { %v1023_v58 = vadd.f32 %v464_v57, %v454_v56 }
  0xc9   :  { %702 = vmatpush3.bf16.msra.mxu0 %v771_v37 }
  0xca   :  { %703 = vmatprep.subr.bf16.mxu0 %v896_v2  ;;  %v469_v59 = vand.u32 2139095040, %v1023_v58  ;;  %v466_v10 = vand.u32 2147483647, %v1023_v58  ;;  %vm468_vm0 = vcmp.lt.s32.totalorder %v1023_v58, 0  ;;  %vm558_vm5 = vweird.f32 %v1023_v58 }
  0xcc   :  { %v470_v60 = vshrl.u32 %v469_v59, 23  ;;  %v473_v22 = vand.u32 8388607, %v466_v10  ;;  %vm467_vm1 = vcmp.le.f32.partialorder %v466_v10, 0.7853982 }
  0xcd   :  { %704 = vmatpush3.bf16.msra.mxu0 %v772_v38 }
  0xce   :  { %705 = vmatprep.subr.bf16.mxu0 %v896_v2  ;;  %v624_v61 = vadd.s32 4294967169, %v470_v60  ;;  %v474_v28 = vor.u32 8388608, %v473_v22 }
  0xd0   :  { %v476_v62 = vadd.s32 1, %v624_v61  ;;  %v514_v33 = vshll.u32 %v474_v28, 8 }
  0xd1   :  { %706 = vmatpush3.bf16.msra.mxu0 %v773_v39 }
  0xd2   :  { %707 = vmatprep.subr.bf16.mxu0 %v896_v2  ;;  %vm477_vm9 = vcmp.gt.s32.totalorder %v476_v62, 0 }
  0xd3   :  { %v478_v63 = vsel %vm477_vm9, %v476_v62, 0 }
  0xd4   :  { %v480_v0 = vand.u32 31, %v478_v63  ;;  %v479_v6 = vshrl.u32 %v478_v63, 5 }
  0xd5   :  { %708 = vmatpush3.bf16.msra.mxu0 %v774_v40 }
  0xd6   :  { %709 = vmatprep.subr.bf16.mxu0 %v896_v2  ;;  %v481_v1 = vsub.s32 32, %v480_v0  ;;  %v905_v2 = vmov 2102212464   ;;  %v495_v7 = vshll.u32 %v906_v4, %v480_v0  ;;  %v483_v12 = vshll.u32 %v908_v11, %v480_v0 }
  0xd7   :  { %v492_v3 = vshll.u32 %v905_v2, %v480_v0  ;;  %v486_v14 = vshll.u32 %v909_v13, %v480_v0  ;;  %v489_v18 = vshll.u32 %v910_v16, %v480_v0  ;;  %vm501_vm10 = vcmp.lt.s32.totalorder %v479_v6, 4 }
  0xd8   :  { %v493_v5 = vshrl.u32 %v906_v4, %v481_v1  ;;  %v496_v9 = vshrl.u32 %v907_v8, %v481_v1  ;;  %v484_v15 = vshrl.u32 %v909_v13, %v481_v1  ;;  %v487_v17 = vshrl.u32 %v910_v16, %v481_v1 }
  0xd9   :  { %710 = vmatpush3.bf16.msra.mxu0 %v775_v41  ;;  %v490_v19 = vshrl.u32 %v905_v2, %v481_v1  ;;  %vm498_vm11 = vcmp.lt.s32.totalorder %v479_v6, 1  ;;  %vm500_vm12 = vcmp.lt.s32.totalorder %v479_v6, 3  ;;  %vm499_vm13 = vcmp.lt.s32.totalorder %v479_v6, 2 }
  0xda   :  { %v494_v20 = vor.u32 %v493_v5, %v492_v3  ;;  %v497_v21 = vor.u32 %v496_v9, %v495_v7  ;;  %v485_v23 = vor.u32 %v484_v15, %v483_v12  ;;  %v488_v24 = vor.u32 %v487_v17, %v486_v14 }
  0xdb   :  { %v491_v25 = vor.u32 %v490_v19, %v489_v18  ;;  %v482_v38 = vshrl.u32 %v908_v11, %v481_v1 }
  0xdc   :  { %712 = vmatmul.mubr.msk.bf16.vlgmr.msra.gmra.mxu0 %vm989_vm8, %v904_v34  ;;  %v507_v26 = vsel %vm501_vm10, %v494_v20, 920167782  ;;  %v511_v27 = vsel %vm501_vm10, %v497_v21, 1326507024  ;;  %v506_v29 = vsel %vm498_vm11, %v485_v23, %v488_v24 }
  0xdd   :  { %v508_v30 = vsel %vm500_vm12, %v491_v25, %v507_v26  ;;  %v510_v31 = vsel %vm498_vm11, %v488_v24, %v491_v25  ;;  %v512_v32 = vsel %vm500_vm12, %v494_v20, %v511_v27  ;;  %v503_v41 = vsel %vm501_vm10, %v491_v25, 2102212464 }
  0xde   :  { %v509_v34 = vsel %vm499_vm13, %v506_v29, %v508_v30  ;;  %v513_v35 = vsel %vm499_vm13, %v510_v31, %v512_v32  ;;  %v502_v42 = vsel %vm498_vm11, %v482_v38, %v485_v23  ;;  %v504_v43 = vsel %vm500_vm12, %v488_v24, %v503_v41 }
  0xdf   :  { %v1037_v36 = vmul.u32.u64.low %v514_v33, %v509_v34  ;;  %v1038_v37 = vmul.u32.u64.high %v514_v33, %v509_v34, %v1037_v36  ;;  %v1040_v39 = vmul.u32.u64.low %v514_v33, %v513_v35  ;;  %v1041_v40 = vmul.u32.u64.high %v514_v33, %v513_v35, %v1040_v39 }
  0xe0   :  { %v505_v44 = vsel %vm499_vm13, %v502_v42, %v504_v43 }
  0xe1   :  { %v524_v45 = vadd.s32 1, %v1038_v37  ;;  %vm523_vm14 = vc.u32 %v1041_v40, %v1037_v36  ;;  %v521_v46 = vmul.u32 %v514_v33, %v505_v44  ;;  %v522_v60 = vadd.s32 %v1037_v36, %v1041_v40 }
  0xe3   :  { %v525_v47 = vsel %vm523_vm14, %v524_v45, %v1038_v37 }
  0xe4   :  { %v526_v48 = vadd.s32 %v525_v47, %v521_v46 }
  0xe6   :  { %v527_v49 = vadd.s32 536870912, %v526_v48 }
  0xe8   :  { %v528_v50 = vshrl.u32 %v527_v49, 30 }
  0xea   :  { %v529_v51 = vshll.u32 %v528_v50, 30  ;;  %v552_v19 = vsub.s32 4, %v528_v50 }
  0xec   :  { %v530_v52 = vsub.s32 %v526_v48, %v529_v51  ;;  %v553_v20 = vsel %vm468_vm0, %v552_v19, %v528_v50 }
  0xed   :  { %v555_v21 = vsel %vm467_vm1, 0, %v553_v20 }
  0xee   :  { %v532_v53 = vsub.s32 0, %v530_v52  ;;  %v559_v22 = vadd.s32 3, %v555_v21 }
  0xf0   :  { %v625_v54 = vmin.u32 %v532_v53, %v530_v52  ;;  %v560_v25 = vand.u32 3, %v559_v22 }
  0xf2   :  { %v534_v55 = vclz %v625_v54  ;;  %vm562_vm2 = vcmp.eq.s32.totalorder %v560_v25, 0  ;;  %vm565_vm3 = vcmp.eq.s32.totalorder %v560_v25, 2  ;;  %vm561_vm4 = vcmp.lt.s32.totalorder %v560_v25, 2 }
  0xf4   :  { %v626_v56 = vadd.s32 4294967294, %v534_v55 }
  0xf6   :  { %vm627_vm15 = vcmp.lt.s32.totalorder %v626_v56, 0 }
  0xf7   :  { %v537_v57 = vsel %vm627_vm15, 0, %v626_v56 }
  0xf8   :  { %v542_v59 = vsub.s32 4294967266, %v537_v57  ;;  %v538_v61 = vsub.s32 32, %v537_v57  ;;  %v539_v63 = vshll.u32 %v530_v52, %v537_v57 }
  0xfa   :  { %v543_v62 = vadd.s32 127, %v542_v59  ;;  %v540_v0 = vshrl.u32 %v522_v60, %v538_v61 }
  0xfc   :  { %v544_v1 = vshll.u32 %v543_v62, 23  ;;  %v541_v2 = vor.u32 %v540_v0, %v539_v63 }
  0xfe   :  { %v545_v3 = vor.u32 4788187, %v544_v1  ;;  %v548_v5 = vcvt.s32.f32 %v541_v2 }
 0x100   :  { %v546_v4 = vand.u32 2147483647, %v545_v3 }
 0x102   :  { %v549_v6 = vmul.f32 %v548_v5, %v546_v4 }
 0x104   :  { %v550_v7 = vxor.u32 2147483648, %v549_v6 }
 0x106   :  { %v551_v11 = vsel %vm468_vm0, %v550_v7, %v549_v6 }
 0x107   :  { %v554_v16 = vsel %vm467_vm1, %v1023_v58, %v551_v11 }
 0x108   :  { %776 = vcosq.f32 %v554_v16 }
 0x109   :  { %778 = vsinq.f32 %v554_v16 }
 0x115   :  { %v777_v23 = vpop.eup %776 }
 0x116   :  { %v779_v24 = vpop.eup %778  ;;  %v566_v10 = vxor.u32 2147483648, %v777_v23 }
 0x117   :  { %v563_v26 = vxor.u32 2147483648, %v779_v24 }
 0x118   :  { %v567_v28 = vsel %vm565_vm3, %v566_v10, %v779_v24 }
 0x119   :  { %v564_v27 = vsel %vm562_vm2, %v777_v23, %v563_v26 }
 0x11a   :  { %v568_v30 = vsel %vm561_vm4, %v564_v27, %v567_v28 }
 0x11b   :  { %v569_v33 = vsel %vm558_vm5, nan, %v568_v30 }
 0x17c   :  { %v216_v8 = vpop.f32.mrf.mxu0  ;;  %v304_v9 = vpop.f32.mrf.mxu1 }
 0x17d   :  { %v305_v29 = vadd.f32 %v304_v9, %v216_v8 }
 0x17e   :  { %v673_v12 = vpop.f32.mrf.mxu0  ;;  %v693_v13 = vpop.f32.mrf.mxu1 }
 0x180   :  { %v219_v14 = vpop.f32.mrf.mxu0  ;;  %v307_v15 = vpop.f32.mrf.mxu1 }
 0x182   :  { %v674_v17 = vpop.f32.mrf.mxu0  ;;  %v694_v18 = vpop.f32.mrf.mxu1 }
 0x19c   :  { %v408_v31 = vpop.f32.mrf.mxu0 }
 0x19d   :  { %v414_v32 = vadd.f32 %v408_v31, %v305_v29 }
 0x19e   :  { %v713_v34 = vpop.f32.mrf.mxu0 }
 0x19f   :  { %v570_v35 = vadd.f32 %v569_v33, %v414_v32 }
 0x1a0   :  { %v411_v36 = vpop.f32.mrf.mxu0 }
 0x1a1   :  { %571 = vst [vmem:[#allocation10] sm:$0x3] %v570_v35 }
 0x1a2   :  { %v714_v37 = vpop.f32.mrf.mxu0 }
 0x1a3   :  { %871 = shalt.err (!%p868_p10)
}
 0x1a4   :  { %581 = dma.vmem_to_hbm [thread:$0]  %s579_s5, 32, %s1065_s6, [#allocation4]  }
 0x1a5   :  { %886 = dma.done.wait [#allocation4], 32  }
 0x1a6   :  { %887 = vsyncadd [#allocation4], 4294967264 }
 0x1a7   :  { %585 = vsyncpa [#allocation3], 1 }
 0x1a8   :  { %586 = vsyncpa [#allocation6], 1 }
 0x1a9   :  { %587 = vsyncpa [#allocation9], 1 }
 0x1aa   :  { %588 = vsyncpa [#allocation4], 1 }

</bundles_post_ra>
